<compile_context>
chip_gen: v7x
topology: tpu7x:2x2x1
jax: 0.10.0
libtpu: 0.0.40
codegen_flags: <defaults>
</compile_context>

<pallas_src>
import functools

import numpy as np
import jax
import jax.numpy as jnp
from jax.experimental import pallas as pl
from jax.experimental.pallas import tpu as pltpu


_VMEM_SLACK = 4 * 1024 * 1024      # headroom for Mosaic internal scratch
_MM_HW_LIMIT = 512                 # max H*W for the flat selection-matmul path (bf16)


# ----------------------------- small host-side helpers -----------------------------

def _vmem_limit_bytes():
    """64 MiB on 128-MiB-VMEM parts (v5e/v6e), conservative 32 MiB otherwise (v7x)."""
    cap = None
    try:
        cap = getattr(pltpu.get_tpu_info(), "vmem_capacity_bytes", None)
    except Exception:
        cap = None
    if cap is not None and cap >= 100 * 1024 * 1024:
        return 64 * 1024 * 1024
    return 32 * 1024 * 1024


def _sublane_align(dtype):
    # rows per packed sublane tile: 8 for 4-byte, 16 for 2-byte, 32 for 1-byte dtypes
    return max(8, 32 // np.dtype(dtype).itemsize)


def _pick_block_rows(n_rows, bytes_per_row, vmem_budget, align, target_steps=4):
    """Largest row block that fits the VMEM budget, capped so there are ~target_steps
    grid steps (DMA/compute overlap + both v7x TCs), aligned to sublane packing."""
    cap = int(vmem_budget // max(1, bytes_per_row))
    cap = max(align, (cap // align) * align)
    split = -(-n_rows // target_steps)            # ceil(n_rows / target_steps)
    split = -(-split // align) * align            # round up to the alignment
    rows = max(align, min(cap, split))
    if rows >= n_rows:
        rows = n_rows                             # full-dim block is always legal
    return rows


@functools.lru_cache(maxsize=None)
def _flat_selection_matrix(H, W, Ho, Wo, np_dtype):
    """0/1 matrix S^T of shape (H*W, Ho*Wo): S^T[q, p] = 1 iff flat input index q is
    the nearest source of flat output index p (torch 'nearest' indexing)."""
    oh = np.arange(Ho)
    ow = np.arange(Wo)
    sh = np.minimum((oh * H) // Ho, H - 1)
    sw = np.minimum((ow * W) // Wo, W - 1)
    src = (sh[:, None] * W + sw[None, :]).reshape(-1)          # (Ho*Wo,)
    q = np.arange(H * W)
    return (q[:, None] == src[None, :]).astype(np_dtype)       # (H*W, Ho*Wo)


@functools.lru_cache(maxsize=None)
def _col_repeat_matrix(W, factor, np_dtype):
    """0/1 matrix (W, W*factor) implementing the nearest repeat along the width."""
    src = np.arange(W * factor) // factor
    q = np.arange(W)
    return (q[:, None] == src[None, :]).astype(np_dtype)


# ------------------------------------ kernels ------------------------------------

def _select_matmul_kernel(x_ref, st_ref, o_ref):
    # x_ref: (bc, H*W)   st_ref: (H*W, Ho*Wo) 0/1   o_ref: (bc, Ho*Wo)
    # Exactly one 1 per output column => the matmul is an exact gather, so
    # accumulating/storing directly in o_ref.dtype (e.g. bf16) is bit-exact and
    # halves the result-side VMEM footprint vs. an f32 accumulator + cast.
    o_ref[...] = jnp.dot(x_ref[...], st_ref[...], preferred_element_type=o_ref.dtype)


def _row_repeat_kernel(x_ref, pw_ref, o_ref, *, factor):
    # x_ref: (R, W)   pw_ref: (W, Wo) 0/1   o_ref: (R, factor, Wo)
    # W-repeat: tiny 0/1 matmul (2*Wo flop/element -> HBM-bound on every chip, no
    # f32-on-MXU issue since the FLOPs are negligible).  H-repeat: the output array
    # is laid out (N*C*H, factor, Wo), whose row-major reshape to NCHW-upsampled is
    # free, so duplicating rows is just `factor` stores of the same tile (DMA only).
    z = jnp.dot(x_ref[...], pw_ref[...], preferred_element_type=o_ref.dtype)
    for i in range(factor):
        o_ref[:, i, :] = z


# ------------------------------------ wrappers ------------------------------------

def _upsample_matmul(x2, H, W, Ho, Wo):
    """Flat lane-dense selection-matmul path.  x2: (N*C, H*W) -> (N*C, Ho*Wo)."""
    NC, HW = x2.shape
    HoWo = Ho * Wo
    dtype = x2.dtype
    isz = np.dtype(dtype).itemsize
    st = _flat_selection_matrix(H, W, Ho, Wo, np.dtype(dtype))

    limit = _vmem_limit_bytes()
    st_bytes = st.size * isz
    # S^T is double-buffered by the default pipeline; it is counted in the budget.
    # TODO(synk): pipeline_mode=pl.Buffered(1) on the S^T spec would reclaim the
    # second buffer (it matters once H*W grows, since S^T scales as (H*W)^2).
    budget = max(1, limit - _VMEM_SLACK - 2 * st_bytes)
    # per-row VMEM: double-buffered input + output blocks + the matmul result tile.
    bytes_per_row = 2 * HW * isz + 2 * HoWo * isz + HoWo * isz
    align = _sublane_align(dtype)
    bc = _pick_block_rows(NC, bytes_per_row, budget, align)
    grid = pl.cdiv(NC, bc)                        # ragged last block: no pad needed

    return pl.pallas_call(
        _select_matmul_kernel,
        out_shape=jax.ShapeDtypeStruct((NC, HoWo), dtype),
        grid_spec=pltpu.PrefetchScalarGridSpec(
            num_scalar_prefetch=0,
            grid=(grid,),
            in_specs=[
                pl.BlockSpec((bc, HW), lambda i: (i, 0)),
                pl.BlockSpec((HW, HoWo), lambda i: (0, 0)),   # fetched once, reused
            ],
            out_specs=pl.BlockSpec((bc, HoWo), lambda i: (i, 0)),
        ),
        compiler_params=pltpu.CompilerParams(
            dimension_semantics=("parallel",),
            vmem_limit_bytes=limit,
        ),
        cost_estimate=pl.CostEstimate(
            flops=2 * NC * HW * HoWo,
            transcendentals=0,
            bytes_accessed=NC * (HW + HoWo) * isz + st_bytes,
        ),
    )(x2, st)


def _upsample_repeat(x3, W, factor):
    """Memory-bound repeat path.  x3: (N*C*H, W) -> (N*C*H, factor, W*factor)."""
    NCH = x3.shape[0]
    Wo = W * factor
    dtype = x3.dtype
    isz = np.dtype(dtype).itemsize
    pw = _col_repeat_matrix(W, factor, np.dtype(dtype))

    limit = _vmem_limit_bytes()
    pw_bytes = pw.size * isz
    budget = max(1, limit - _VMEM_SLACK - 2 * pw_bytes)
    # double-buffered input + output blocks + the (R, Wo) matmul intermediate.
    bytes_per_row = 2 * W * isz + 2 * factor * Wo * isz + Wo * isz
    align = _sublane_align(dtype)
    rows = _pick_block_rows(NCH, bytes_per_row, budget, align)
    grid = pl.cdiv(NCH, rows)                     # ragged last block: no pad needed

    return pl.pallas_call(
        functools.partial(_row_repeat_kernel, factor=factor),
        out_shape=jax.ShapeDtypeStruct((NCH, factor, Wo), dtype),
        grid_spec=pltpu.PrefetchScalarGridSpec(
            num_scalar_prefetch=0,
            grid=(grid,),
            in_specs=[
                pl.BlockSpec((rows, W), lambda i: (i, 0)),
                pl.BlockSpec((W, Wo), lambda i: (0, 0)),      # fetched once, reused
            ],
            out_specs=pl.BlockSpec((rows, factor, Wo), lambda i: (i, 0, 0)),
        ),
        compiler_params=pltpu.CompilerParams(
            dimension_semantics=("parallel",),
            vmem_limit_bytes=limit,
        ),
        cost_estimate=pl.CostEstimate(
            flops=2 * NCH * W * Wo,
            transcendentals=0,
            bytes_accessed=NCH * (W + factor * Wo) * isz + pw_bytes,
        ),
    )(x3, pw)


def upsample2(x, scale_factor=2, mode="nearest"):
    """Equivalent of torch.nn.functional.interpolate(x, scale_factor, mode='nearest')
    on an NCHW tensor (the Upsample2 module's forward pass)."""
    # TODO(synk): only 'nearest' is implemented; bilinear/bicubic modes are not.
    assert mode == "nearest", "only 'nearest' mode is implemented"
    N, C, H, W = x.shape
    Ho = int(H * scale_factor)
    Wo = int(W * scale_factor)

    orig_dtype = x.dtype
    if not jnp.issubdtype(orig_dtype, jnp.floating):
        # Nearest upsample only copies values; narrow ints go through f32 exactly.
        assert np.dtype(orig_dtype).itemsize <= 2, (
            "int32/int64 inputs would lose exactness in the f32 compute path")
        x = x.astype(jnp.float32)
    elif np.dtype(orig_dtype).itemsize > 4:       # f64 -> TPU-friendly f32
        x = x.astype(jnp.float32)
    dtype = x.dtype

    int_factor = (int(scale_factor)
                  if float(scale_factor) == int(scale_factor) else None)
    small_float16 = (jnp.issubdtype(dtype, jnp.floating)
                     and np.dtype(dtype).itemsize <= 2)
    # Selection matmul only where it stays on the HBM roofline (MXU-native bf16/f16,
    # small H*W) or where it is the only option (fractional scale factors).
    # f32 and large images take the repeat path: 2*Wo flop/elem keeps it HBM-bound
    # on v5e and on v7x (whose MXU has no native f32).
    use_matmul = (int_factor is None) or (small_float16 and H * W <= _MM_HW_LIMIT)

    if use_matmul:
        out = _upsample_matmul(x.reshape(N * C, H * W), H, W, Ho, Wo)
    else:
        out = _upsample_repeat(x.reshape(N * C * H, W), W, int_factor)

    out = out.reshape(N, C, Ho, Wo)               # free row-major view in both cases
    if out.dtype != orig_dtype:
        out = out.astype(orig_dtype)
    return out


if __name__ == "__main__":
    key = jax.random.PRNGKey(0)
    N, C, H, W = 2, 4, 16, 16
    factor = 2
    x = jax.random.normal(key, (N, C, H, W), dtype=jnp.float32)

    # f32 -> repeat path (tiny W-repeat matmul + DMA row duplication, no f32 MXU).
    y = upsample2(x, scale_factor=factor, mode="nearest")
    jax.block_until_ready(y)
    y_ref = jnp.repeat(jnp.repeat(x, factor, axis=2), factor, axis=3)
    assert y.shape == (N, C, H * factor, W * factor), y.shape
    assert jnp.array_equal(y, y_ref), "f32 repeat path mismatch vs reference"

    # bf16 -> flat lane-dense selection-matmul path (MXU-native, exact 0/1 gather).
    xb = x.astype(jnp.bfloat16)
    yb = upsample2(xb, scale_factor=factor, mode="nearest")
    jax.block_until_ready(yb)
    yb_ref = jnp.repeat(jnp.repeat(xb, factor, axis=2), factor, axis=3)
    assert yb.dtype == jnp.bfloat16 and yb.shape == y.shape
    assert jnp.array_equal(yb, yb_ref), "bf16 matmul path mismatch vs reference"

    print("KERNEL_OK")
</pallas_src>

<mosaic_0001>
module attributes {stable_mosaic.version = 11 : i64} {
  func.func @_row_repeat_kernel(%arg0: i32, %arg1: memref<32x16xf32, #tpu.memory_space<vmem>>, %arg2: memref<16x32xf32, #tpu.memory_space<vmem>>, %arg3: memref<32x2x32xf32, #tpu.memory_space<vmem>>) attributes {dimension_semantics = [#tpu.dimension_semantics<parallel>], iteration_bounds = array<i64: 4>, scalar_prefetch = 0 : i64, scratch_operands = 0 : i64, tpu.core_type = #tpu.core_type<tc>, window_params = [{transform_indices = @transform_0, window_bounds = array<i64: 32, 16>}, {pipeline_mode = #tpu.pipeline_mode<synchronous>, transform_indices = @transform_1, window_bounds = array<i64: 16, 32>}, {transform_indices = @transform_2, window_bounds = array<i64: 32, 2, 32>}]} {
    %c0 = arith.constant 0 : index
    %c0_0 = arith.constant 0 : index
    %0 = vector.load %arg1[%c0, %c0_0] : memref<32x16xf32, #tpu.memory_space<vmem>>, vector<32x16xf32>
    %c0_1 = arith.constant 0 : index
    %c0_2 = arith.constant 0 : index
    %1 = vector.load %arg2[%c0_1, %c0_2] : memref<16x32xf32, #tpu.memory_space<vmem>>, vector<16x32xf32>
    %cst = arith.constant dense<0.000000e+00> : vector<32x32xf32>
    %2 = tpu.matmul %0, %1, %cst {dimension_numbers = #tpu.dot_dimension_numbers<[1], [0], [0], [1], [0, 0, 1, 1], [], []>} : vector<32x16xf32>, vector<16x32xf32>, vector<32x32xf32> -> vector<32x32xf32>
    %c0_3 = arith.constant 0 : index
    %c0_4 = arith.constant 0 : index
    %c0_5 = arith.constant 0 : index
    %3 = vector.load %arg3[%c0_3, %c0_4, %c0_5] : memref<32x2x32xf32, #tpu.memory_space<vmem>>, vector<32x1x32xf32>
    %4 = vector.shape_cast %3 : vector<32x1x32xf32> to vector<32x32xf32>
    %5 = vector.shape_cast %2 : vector<32x32xf32> to vector<32x1x32xf32>
    tpu.vector_store %arg3[%c0_3, %c0_4, %c0_5], %5 {strides = array<i32>} : memref<32x2x32xf32, #tpu.memory_space<vmem>>, vector<32x1x32xf32>,
    %c0_6 = arith.constant 0 : index
    %c1 = arith.constant 1 : index
    %c0_7 = arith.constant 0 : index
    %6 = vector.load %arg3[%c0_6, %c1, %c0_7] : memref<32x2x32xf32, #tpu.memory_space<vmem>>, vector<32x1x32xf32>
    %7 = vector.shape_cast %6 : vector<32x1x32xf32> to vector<32x32xf32>
    %8 = vector.shape_cast %2 : vector<32x32xf32> to vector<32x1x32xf32>
    tpu.vector_store %arg3[%c0_6, %c1, %c0_7], %8 {strides = array<i32>} : memref<32x2x32xf32, #tpu.memory_space<vmem>>, vector<32x1x32xf32>,
    return
  }
  func.func @transform_0(%arg0: i32) -> (i32, i32) {
    %c0_i32 = arith.constant 0 : i32
    %c0_i32_0 = arith.constant 0 : i32
    return %arg0, %c0_i32 : i32, i32
  }
  func.func @transform_1(%arg0: i32) -> (i32, i32) {
    %c0_i32 = arith.constant 0 : i32
    %c0_i32_0 = arith.constant 0 : i32
    %c0_i32_1 = arith.constant 0 : i32
    return %c0_i32, %c0_i32_0 : i32, i32
  }
  func.func @transform_2(%arg0: i32) -> (i32, i32, i32) {
    %c0_i32 = arith.constant 0 : i32
    %c0_i32_0 = arith.constant 0 : i32
    %c0_i32_1 = arith.constant 0 : i32
    return %arg0, %c0_i32, %c0_i32_0 : i32, i32, i32
  }
}

</mosaic_0001>

<bundles_post_ra>
// kernel: tpu_custom_call.1
= control target key start
LH: loop header
LB: loop body
LE: loop exit
PB: predicated region body
PF: predicated region fallthrough
CT: control target
= control target key end

     0   :  { %s674_s9 = smov 0   ;;  %s863_s0 = inlined_call_operand.vmem [shape: f32[128,16], index: 0, kind: input, shape index: {}]   ;;  %s864_s1 = inlined_call_operand.vmem [shape: f32[16,32], index: 1, kind: input, shape index: {}]   ;;  %s865_s2 = inlined_call_operand.vmem [shape: f32[128,2,32], index: 2, kind: output, shape index: {}]  }
   0x1 LB: > { %s604_s10 = sadd.s32 4294967295, %s656_s9   ;;  %p608_p0 = scmp.ge.s32.totalorder %s656_s9, 1  ;;  %s656_s9 = sphi %s674_s9, %s12_s9  }
   0x2   : > { %p113_p1 = scmp.lt.s32.totalorder %s656_s9, 5 }
   0x4   : > { %p114_p2 = pnand %p608_p0, %p113_p1 }
   0x5   : > { %v151_v0 = vld [vmem:[%s864_s1] sm:$0xff] (!%p114_p2)  ;;  %v152_v1 = vld [vmem:[%s864_s1 + $0x8] sm:$0xff] (!%p114_p2)  ;;  %s609_s15 = sshll.u32 (!%p114_p2), %s604_s10, 2  ;;  %vm153_vm0 = vcmask (!%p114_p2), 130048   ;;  %s611_s20 = sshll.u32 (!%p114_p2), %s604_s10, 5  ;;  %v259_v9 = vlaneseq (!%p114_p2)  ;;  %vm483_vm1 = vcmask (!%p114_p2), 253952  }
   0x6   : > { %117 = sbr.rel (%p114_p2) target bundleno = 267 (0x10b), region = 28  ;;  %v635_v2 = vpack.c.bf16 (!%p114_p2), %v152_v1, %v151_v0  ;;  %p136_p3 = scmp.lt.s32.totalorder (!%p114_p2), %s609_s15, 15  ;;  %v658_v7 = vmov (!%p114_p2), 1966171168  }
   0x7   : > { %v257_v8 = vunpack.c.l.s4 (!%p114_p2), %v658_v7  ;;  %p142_p4 = scmp.lt.s32.totalorder (!%p114_p2), %s611_s20, 127  ;;  %v260_v11 = vshrl.u32 (!%p114_p2), %v259_v9, 7 }
   0x8   : > { %636 = vmatprep.subr.bf16.mxu0 (!%p114_p2), %v635_v2  ;;  %639 = vmatprep.subr.bf16.mxu1 (!%p114_p2), %v635_v2 }
   0x9   : > { %638 = vmatpush3.bf16.msra.mxu0 (!%p114_p2), %v635_v2  ;;  %640 = vmatpush3.bf16.msra.mxu1 (!%p114_p2), %v635_v2  ;;  %v258_v10 = vunpack.c.0.s8 (!%p114_p2), %v257_v8 }
   0xb   : > { %v691_v12 = vsub.s32 (!%p114_p2), %v258_v10, %v260_v11 }
   0xd   : > { %s867_s15 = smov (!%p136_p3, %s609_s15), 15  ;;  %s869_s20 = smov (!%p142_p4, %s611_s20), 127 }
   0xe   : > { %s610_s16 = sshll.u32 %s867_s15, 3  ;;  %s612_s21 = sshll.u32 %s869_s20, 1 }
   0xf   : > { %s139_s19 = scalar_lea.vmem %s863_s0, %s610_s16  ;;  %s700_s24 = scalar_lea.vmem %s865_s2, %s612_s21 }
  0x10   : > { %v147_v3 = vld [vmem:[%s139_s19] sm:$0xff]  ;;  %v149_v4 = vld [vmem:[%s139_s19 + $0x10] sm:$0xff]  ;;  %v148_v5 = vld [vmem:[%s139_s19 + $0x8] sm:$0xff] }
  0x11   : > { %629 = vmatprep.mubr.msk.f32.mxu0 %vm153_vm0, %v147_v3  ;;  %632 = vmatprep.mubr.msk.f32.mxu1 %vm153_vm0, %v149_v4  ;;  %v150_v6 = vld [vmem:[%s139_s19 + $0x18] sm:$0xff] }
  0x12   : > { %630 = vmatmul.mubr.msk.f32.vlgmr.msra.gmra.mrb[0].mxu0 %vm153_vm0, %v148_v5  ;;  %633 = vmatmul.mubr.msk.f32.vlgmr.msra.gmra.mrb[0].mxu1 %vm153_vm0, %v150_v6 }
  0xe5   : > { %v631_v13 = vpop.f32.mrb[0].mxu0  ;;  %v634_v14 = vpop.f32.mrb[0].mxu1 }
  0xe6   : > { %v304_v15 = vcombine.high %v631_v13, %v631_v13  ;;  %v311_v16 = vrot.slane %v631_v13, %v691_v12  ;;  %v402_v17 = vcombine.high %v634_v14, %v634_v14  ;;  %v409_v18 = vrot.slane %v634_v14, %v691_v12  ;;  %v232_v19 = vpop.f32.mrb[1].mxu0  ;;  %v695_v20 = vpop.f32.mrb[1].mxu1 }
  0xe7   : > { %v255_v21 = vcombine.high %v232_v19, %v232_v19  ;;  %v262_v22 = vrot.slane %v232_v19, %v691_v12  ;;  %v353_v23 = vcombine.high %v695_v20, %v695_v20  ;;  %v707_v24 = vrot.slane %v695_v20, %v691_v12 }
  0xe8   : > { %v318_v25 = vrot.slane %v304_v15, %v691_v12  ;;  %v319_v26 = vcombine.high %v311_v16, %v311_v16  ;;  %v327_v27 = vrot.slane %v311_v16, %v691_v12  ;;  %v416_v28 = vrot.slane %v402_v17, %v691_v12 }
  0xe9   : > { %v417_v29 = vcombine.high %v409_v18, %v409_v18  ;;  %v425_v30 = vrot.slane %v409_v18, %v691_v12  ;;  %v269_v31 = vrot.slane %v255_v21, %v691_v12  ;;  %v270_v32 = vcombine.high %v262_v22, %v262_v22 }
  0xea   : > { %v320_v33 = vcombine.high %v318_v25, %v318_v25  ;;  %v334_v34 = vrot.slane %v318_v25, %v691_v12  ;;  %v341_v35 = vrot.slane %v319_v26, %v691_v12  ;;  %v349_v36 = vcombine.high %v327_v27, %v327_v27  ;;  %492 = vst.msk [vmem:[%s700_s24 + $0x10] sm:$0x1] %vm483_vm1, %v327_v27 }
  0xeb   : > { %524 = vst.msk [vmem:[%s700_s24 + $0x11] sm:$0x1] %vm483_vm1, %v327_v27  ;;  %v418_v37 = vcombine.high %v416_v28, %v416_v28  ;;  %v432_v38 = vrot.slane %v416_v28, %v691_v12  ;;  %v439_v39 = vrot.slane %v417_v29, %v691_v12  ;;  %v447_v40 = vcombine.high %v425_v30, %v425_v30 }
  0xec   : > { %508 = vst.msk [vmem:[%s700_s24 + $0x30] sm:$0x1] %vm483_vm1, %v425_v30  ;;  %540 = vst.msk [vmem:[%s700_s24 + $0x31] sm:$0x1] %vm483_vm1, %v425_v30  ;;  %v348_v41 = vrot.slane %v320_v33, %v691_v12  ;;  %v350_v42 = vcombine.high %v334_v34, %v334_v34  ;;  %v351_v43 = vcombine.high %v341_v35, %v341_v35 }
  0xed   : > { %493 = vst.msk [vmem:[%s700_s24 + $0x12] sm:$0x1] %vm483_vm1, %v341_v35  ;;  %494 = vst.msk [vmem:[%s700_s24 + $0x14] sm:$0x1] %vm483_vm1, %v349_v36  ;;  %v271_v44 = vcombine.high %v269_v31, %v269_v31  ;;  %v446_v45 = vrot.slane %v418_v37, %v691_v12  ;;  %v448_v46 = vcombine.high %v432_v38, %v432_v38 }
  0xee   : > { %496 = vst.msk [vmem:[%s700_s24 + $0x18] sm:$0x1] %vm483_vm1, %v334_v34  ;;  %525 = vst.msk [vmem:[%s700_s24 + $0x13] sm:$0x1] %vm483_vm1, %v341_v35  ;;  %v449_v47 = vcombine.high %v439_v39, %v439_v39  ;;  %v278_v48 = vrot.slane %v262_v22, %v691_v12  ;;  %v352_v49 = vcombine.high %v348_v41, %v348_v41 }
  0xef   : > { %526 = vst.msk [vmem:[%s700_s24 + $0x15] sm:$0x1] %vm483_vm1, %v349_v36  ;;  %528 = vst.msk [vmem:[%s700_s24 + $0x19] sm:$0x1] %vm483_vm1, %v334_v34  ;;  %v285_v50 = vrot.slane %v269_v31, %v691_v12  ;;  %v292_v51 = vrot.slane %v270_v32, %v691_v12  ;;  %v299_v52 = vrot.slane %v271_v44, %v691_v12 }
  0xf0   : > { %509 = vst.msk [vmem:[%s700_s24 + $0x32] sm:$0x1] %vm483_vm1, %v439_v39  ;;  %510 = vst.msk [vmem:[%s700_s24 + $0x34] sm:$0x1] %vm483_vm1, %v447_v40  ;;  %v450_v53 = vcombine.high %v446_v45, %v446_v45  ;;  %v300_v54 = vcombine.high %v278_v48, %v278_v48  ;;  %v367_v55 = vrot.slane %v353_v23, %v691_v12 }
  0xf1   : > { %512 = vst.msk [vmem:[%s700_s24 + $0x38] sm:$0x1] %vm483_vm1, %v432_v38  ;;  %541 = vst.msk [vmem:[%s700_s24 + $0x33] sm:$0x1] %vm483_vm1, %v439_v39  ;;  %v368_v56 = vcombine.high %v707_v24, %v707_v24  ;;  %v301_v57 = vcombine.high %v285_v50, %v285_v50  ;;  %v302_v58 = vcombine.high %v292_v51, %v292_v51 }
  0xf2   : > { %542 = vst.msk [vmem:[%s700_s24 + $0x35] sm:$0x1] %vm483_vm1, %v447_v40  ;;  %544 = vst.msk [vmem:[%s700_s24 + $0x39] sm:$0x1] %vm483_vm1, %v432_v38  ;;  %v303_v59 = vcombine.high %v299_v52, %v299_v52  ;;  %v376_v60 = vrot.slane %v707_v24, %v691_v12  ;;  %v369_v61 = vcombine.high %v367_v55, %v367_v55 }
  0xf3   : > { %495 = vst.msk [vmem:[%s700_s24 + $0x16] sm:$0x1] %vm483_vm1, %v351_v43  ;;  %497 = vst.msk [vmem:[%s700_s24 + $0x1a] sm:$0x1] %vm483_vm1, %v348_v41  ;;  %v383_v62 = vrot.slane %v367_v55, %v691_v12  ;;  %v390_v63 = vrot.slane %v368_v56, %v691_v12 }
  0xf4   : > { %498 = vst.msk [vmem:[%s700_s24 + $0x1c] sm:$0x1] %vm483_vm1, %v350_v42  ;;  %527 = vst.msk [vmem:[%s700_s24 + $0x17] sm:$0x1] %vm483_vm1, %v351_v43  ;;  %v398_v0 = vcombine.high %v376_v60, %v376_v60  ;;  %v397_v1 = vrot.slane %v369_v61, %v691_v12 }
  0xf5   : > { %529 = vst.msk [vmem:[%s700_s24 + $0x1b] sm:$0x1] %vm483_vm1, %v348_v41  ;;  %530 = vst.msk [vmem:[%s700_s24 + $0x1d] sm:$0x1] %vm483_vm1, %v350_v42  ;;  %v399_v2 = vcombine.high %v383_v62, %v383_v62  ;;  %v400_v3 = vcombine.high %v390_v63, %v390_v63 }
  0xf6   : > { %511 = vst.msk [vmem:[%s700_s24 + $0x36] sm:$0x1] %vm483_vm1, %v449_v47  ;;  %513 = vst.msk [vmem:[%s700_s24 + $0x3a] sm:$0x1] %vm483_vm1, %v446_v45  ;;  %v401_v4 = vcombine.high %v397_v1, %v397_v1 }
  0xf7   : > { %514 = vst.msk [vmem:[%s700_s24 + $0x3c] sm:$0x1] %vm483_vm1, %v448_v46  ;;  %543 = vst.msk [vmem:[%s700_s24 + $0x37] sm:$0x1] %vm483_vm1, %v449_v47 }
  0xf8   : > { %545 = vst.msk [vmem:[%s700_s24 + $0x3b] sm:$0x1] %vm483_vm1, %v446_v45  ;;  %546 = vst.msk [vmem:[%s700_s24 + $0x3d] sm:$0x1] %vm483_vm1, %v448_v46 }
  0xf9   : > { %484 = vst.msk [vmem:[%s700_s24] sm:$0x1] %vm483_vm1, %v278_v48  ;;  %516 = vst.msk [vmem:[%s700_s24 + $0x1] sm:$0x1] %vm483_vm1, %v278_v48 }
  0xfa   : > { %499 = vst.msk [vmem:[%s700_s24 + $0x1e] sm:$0x1] %vm483_vm1, %v352_v49  ;;  %531 = vst.msk [vmem:[%s700_s24 + $0x1f] sm:$0x1] %vm483_vm1, %v352_v49 }
  0xfb   : > { %485 = vst.msk [vmem:[%s700_s24 + $0x2] sm:$0x1] %vm483_vm1, %v292_v51  ;;  %488 = vst.msk [vmem:[%s700_s24 + $0x8] sm:$0x1] %vm483_vm1, %v285_v50 }
  0xfc   : > { %489 = vst.msk [vmem:[%s700_s24 + $0xa] sm:$0x1] %vm483_vm1, %v299_v52  ;;  %517 = vst.msk [vmem:[%s700_s24 + $0x3] sm:$0x1] %vm483_vm1, %v292_v51 }
  0xfd   : > { %520 = vst.msk [vmem:[%s700_s24 + $0x9] sm:$0x1] %vm483_vm1, %v285_v50  ;;  %521 = vst.msk [vmem:[%s700_s24 + $0xb] sm:$0x1] %vm483_vm1, %v299_v52 }
  0xfe   : > { %515 = vst.msk [vmem:[%s700_s24 + $0x3e] sm:$0x1] %vm483_vm1, %v450_v53  ;;  %547 = vst.msk [vmem:[%s700_s24 + $0x3f] sm:$0x1] %vm483_vm1, %v450_v53 }
  0xff   : > { %486 = vst.msk [vmem:[%s700_s24 + $0x4] sm:$0x1] %vm483_vm1, %v300_v54  ;;  %518 = vst.msk [vmem:[%s700_s24 + $0x5] sm:$0x1] %vm483_vm1, %v300_v54 }
 0x100   : > { %487 = vst.msk [vmem:[%s700_s24 + $0x6] sm:$0x1] %vm483_vm1, %v302_v58  ;;  %490 = vst.msk [vmem:[%s700_s24 + $0xc] sm:$0x1] %vm483_vm1, %v301_v57 }
 0x101   : > { %491 = vst.msk [vmem:[%s700_s24 + $0xe] sm:$0x1] %vm483_vm1, %v303_v59  ;;  %519 = vst.msk [vmem:[%s700_s24 + $0x7] sm:$0x1] %vm483_vm1, %v302_v58 }
 0x102   : > { %522 = vst.msk [vmem:[%s700_s24 + $0xd] sm:$0x1] %vm483_vm1, %v301_v57  ;;  %523 = vst.msk [vmem:[%s700_s24 + $0xf] sm:$0x1] %vm483_vm1, %v303_v59 }
 0x103   : > { %500 = vst.msk [vmem:[%s700_s24 + $0x20] sm:$0x1] %vm483_vm1, %v376_v60  ;;  %532 = vst.msk [vmem:[%s700_s24 + $0x21] sm:$0x1] %vm483_vm1, %v376_v60 }
 0x104   : > { %501 = vst.msk [vmem:[%s700_s24 + $0x22] sm:$0x1] %vm483_vm1, %v390_v63  ;;  %504 = vst.msk [vmem:[%s700_s24 + $0x28] sm:$0x1] %vm483_vm1, %v383_v62 }
 0x105   : > { %533 = vst.msk [vmem:[%s700_s24 + $0x23] sm:$0x1] %vm483_vm1, %v390_v63  ;;  %536 = vst.msk [vmem:[%s700_s24 + $0x29] sm:$0x1] %vm483_vm1, %v383_v62 }
 0x106   : > { %502 = vst.msk [vmem:[%s700_s24 + $0x24] sm:$0x1] %vm483_vm1, %v398_v0  ;;  %534 = vst.msk [vmem:[%s700_s24 + $0x25] sm:$0x1] %vm483_vm1, %v398_v0 }
 0x107   : > { %503 = vst.msk [vmem:[%s700_s24 + $0x26] sm:$0x1] %vm483_vm1, %v400_v3  ;;  %505 = vst.msk [vmem:[%s700_s24 + $0x2a] sm:$0x1] %vm483_vm1, %v397_v1 }
 0x108   : > { %506 = vst.msk [vmem:[%s700_s24 + $0x2c] sm:$0x1] %vm483_vm1, %v399_v2  ;;  %535 = vst.msk [vmem:[%s700_s24 + $0x27] sm:$0x1] %vm483_vm1, %v400_v3 }
 0x109   : > { %537 = vst.msk [vmem:[%s700_s24 + $0x2b] sm:$0x1] %vm483_vm1, %v397_v1  ;;  %538 = vst.msk [vmem:[%s700_s24 + $0x2d] sm:$0x1] %vm483_vm1, %v399_v2 }
 0x10a   : > { %507 = vst.msk [vmem:[%s700_s24 + $0x2e] sm:$0x1] %vm483_vm1, %v401_v4  ;;  %539 = vst.msk [vmem:[%s700_s24 + $0x2f] sm:$0x1] %vm483_vm1, %v401_v4 }
 0x10b PF: > { %s12_s9 = sadd.s32 1, %s656_s9  }
 0x10c   : > { %p9_p5 = scmp.ge.s32.totalorder %s12_s9, 6  }
 0x10e   :  { %11 = sbr.rel (!%p9_p5) target bundleno = 1 (0x1), region = 58 }

</bundles_post_ra>
